<compile_context>
chip_gen: v5e
topology: v5e:2x2
jax: 0.10.0
libtpu: 0.0.40
codegen_flags: <defaults>
</compile_context>

<pallas_src>
import functools

import jax
import jax.numpy as jnp
from jax import lax
from jax.experimental import pallas as pl
from jax.experimental.pallas import tpu as pltpu


def _mix_aware_loss_kernel(q_ref, k_ref, p_ref, inq_ref, inp_ref, ink_ref,
                           loss_ref, *, inv_t_pos, inv_t_neg, block_q, block_k):
    """One (row-tile i, column-tile j) step of the similarity / denominator sweep."""
    i = pl.program_id(0)               # query-row tile of view-1
    j = pl.program_id(1)               # key-column tile of view-1 (reduction axis)
    nj = pl.num_programs(1)

    q = q_ref[...]                     # (tm, D) original dtype (bf16 stays bf16 on MXU)
    k = k_ref[...]                     # (tn, D)

    # Raw Gram on the MXU, f32 accumulate (no normalized copy of reps exists).
    gram = lax.dot_general(q, k, (((1,), (1,)), ((), ())),
                           preferred_element_type=jnp.float32)        # (tm, tn)

    inv_nq = inq_ref[...]              # (tm, 1) f32, hoisted to the wrapper
    inv_nk = ink_ref[...]              # (1, tn) f32, hoisted to the wrapper

    # Cosine similarities via outer-product scaling of the raw Gram, then
    # exp((sim - 1)/t_neg); sim <= 1 (+fp eps) so the exponent never overflows.
    e = jnp.exp((gram * inv_nq * inv_nk - 1.0) * inv_t_neg)           # (tm, tn)

    @pl.when(j == 0)
    def _init():
        loss_ref[...] = jnp.zeros_like(loss_ref)

    # Drop the diagonal of the (B, B) similarity block (negatives_mask == ~eye),
    # but only on tiles that intersect the diagonal (i == j when tm == tn).
    row_lo = i * block_q
    col_lo = j * block_k
    on_diag = jnp.logical_and(row_lo < col_lo + block_k,
                              col_lo < row_lo + block_q)

    @pl.when(on_diag)
    def _accum_masked():
        row_g = row_lo + lax.broadcasted_iota(jnp.int32, e.shape, 0)
        col_g = col_lo + lax.broadcasted_iota(jnp.int32, e.shape, 1)
        em = jnp.where(row_g != col_g, e, 0.0)
        loss_ref[...] += jnp.sum(em, axis=-1, keepdims=True)          # (tm, 1)

    @pl.when(jnp.logical_not(on_diag))
    def _accum():
        loss_ref[...] += jnp.sum(e, axis=-1, keepdims=True)           # (tm, 1)

    @pl.when(j == nj - 1)
    def _finalize():
        # positives_i = cos(view1_i, view2_i); computed once per row tile.
        qf = q.astype(jnp.float32)
        pf = p_ref[...].astype(jnp.float32)
        pos = jnp.sum(qf * pf, axis=-1, keepdims=True) * inv_nq * inp_ref[...]
        # loss_partial = -log(exp(pos/t_pos) / denom) = log(denom) - pos/t_pos,
        # with log(denom) = log(acc) + 1/t_neg (shift added back here).
        # TODO(synk): for extremely small t_neg a running-max log-sum-exp would
        # avoid underflow of the shifted exp; unreachable at the default 0.1.
        loss_ref[...] = jnp.log(loss_ref[...]) + inv_t_neg - pos * inv_t_pos


def _pick_tile_q(b):
    # Large row tiles raise key-stream arithmetic intensity (keys are re-read
    # B/tm times), but keep >= 2 row tiles so the "parallel" axis can be
    # sharded across both v7x TensorCores.
    for cand in (512, 256, 128):
        if b % cand == 0 and b // cand >= 2:
            return cand
    for cand in (256, 128):
        if b % cand == 0:
            return cand
    return b


def _pick_tile_k(b):
    # 256-wide result tiles fill the 256-wide MXU on v6e/v7x (128 native on v5e).
    for cand in (256, 128):
        if b % cand == 0:
            return cand
    return b


def mix_aware_loss(representations, batch_size,
                   temperature_pos=0.05, temperature_neg=0.1,
                   *, block_q=None, block_k=None):
    """representations: (2*batch_size, D) array. Returns the scalar f32 loss."""
    N, D = representations.shape
    B = batch_size
    assert N == 2 * B, "expects stacked pair of views: [2*B, D]"
    # TODO(synk): relax via row padding; row tiles must be sublane (8) aligned.
    assert B % 8 == 0, "batch_size must be a multiple of 8"

    tm = block_q if block_q is not None else _pick_tile_q(B)
    tn = block_k if block_k is not None else _pick_tile_k(B)
    assert B % tm == 0 and B % tn == 0 and tm % 8 == 0 and tn % 8 == 0

    ni, nj = B // tm, B // tn
    view2_block_off = B // tm          # block-row offset of the view-2 rows

    # Inverse norms of all 2B rows, hoisted out of the grid (computed once).
    # Matches F.cosine_similarity's eps handling: 1 / max(||x||, eps).
    eps = 1e-8
    reps_f32 = representations.astype(jnp.float32)
    inv_norm = jnp.minimum(
        lax.rsqrt(jnp.sum(reps_f32 * reps_f32, axis=-1, keepdims=True)),
        1.0 / eps)                                   # (2B, 1)
    inv_nq = inv_norm[:B]                            # (B, 1)  view-1 row norms
    inv_np = inv_norm[B:]                            # (B, 1)  view-2 row norms
    inv_nk = inv_norm[:B, 0][None, :]                # (1, B)  lane-dense key norms

    kernel = functools.partial(
        _mix_aware_loss_kernel,
        inv_t_pos=float(1.0 / temperature_pos),      # temperatures are construction-time
        inv_t_neg=float(1.0 / temperature_neg),      # buffers -> baked-in reciprocals
        block_q=tm, block_k=tn)

    itemsize = jnp.dtype(representations.dtype).itemsize
    # Bytes: q + p read once, keys re-streamed ni times, tiny norm vectors + output.
    cost = pl.CostEstimate(
        flops=2 * B * B * D + 2 * B * D + 4 * B * B,
        transcendentals=B * B + B,
        bytes_accessed=(2 * B * D + ni * B * D) * itemsize + 16 * B)

    # VMEM budget: double-buffered (tm,D) q/p + streamed (tn,D) k tiles dominate.
    # TODO(synk): on v7x, pipeline_mode=pl.Buffered(1) on the j-invariant q/p
    # specs would halve their footprint; kept at the default for portability.
    tile_bytes = 2 * (2 * tm + tn) * D * itemsize
    vmem_limit = int(min(max(2 * tile_bytes, 32 * 1024 * 1024),
                         56 * 1024 * 1024))

    per_row = pl.pallas_call(
        kernel,
        out_shape=jax.ShapeDtypeStruct((B, 1), jnp.float32),
        grid=(ni, nj),
        in_specs=[
            pl.BlockSpec((tm, D), lambda i, j: (i, 0)),                 # view-1 queries
            pl.BlockSpec((tn, D), lambda i, j: (j, 0)),                 # view-1 keys (streamed)
            pl.BlockSpec((tm, D),
                         lambda i, j: (i + view2_block_off, 0)),        # view-2 positives
            pl.BlockSpec((tm, 1), lambda i, j: (i, 0)),                 # 1/||q||
            pl.BlockSpec((tm, 1), lambda i, j: (i, 0)),                 # 1/||p||
            pl.BlockSpec((1, tn), lambda i, j: (0, j)),                 # 1/||k|| (lane-dense)
        ],
        out_specs=pl.BlockSpec((tm, 1), lambda i, j: (i, 0)),
        compiler_params=pltpu.CompilerParams(
            dimension_semantics=("parallel", "arbitrary"),
            vmem_limit_bytes=vmem_limit),
        cost_estimate=cost,
    )(representations, representations, representations,
      inv_nq, inv_np, inv_nk)

    return jnp.sum(per_row) / B


def _reference_loss(reps, batch_size, t_pos=0.05, t_neg=0.1):
    """Pure-JAX reference mirroring the PyTorch forward, for validation."""
    reps = reps.astype(jnp.float32)
    norms = jnp.maximum(jnp.linalg.norm(reps, axis=-1, keepdims=True), 1e-8)
    n = reps / norms
    sim = n @ n.T
    B = batch_size
    positives = jnp.diagonal(sim, offset=B)
    sim_small = sim[:B, :B]
    neg_mask = 1.0 - jnp.eye(B, dtype=jnp.float32)
    nominator = jnp.exp(positives / t_pos)
    denominator = jnp.sum(neg_mask * jnp.exp(sim_small / t_neg), axis=1)
    loss_partial = -jnp.log(nominator / denominator)
    return jnp.sum(loss_partial) / B


if __name__ == "__main__":
    key = jax.random.PRNGKey(0)
    k1, k2, k3 = jax.random.split(key, 3)

    # Small toy case (single-tile grid): representations = concat([z_i, z_j]).
    B1, D1 = 8, 128
    reps1 = jax.random.normal(k1, (2 * B1, D1), dtype=jnp.float32)
    out1 = jax.block_until_ready(mix_aware_loss(reps1, B1))
    ref1 = jax.block_until_ready(_reference_loss(reps1, B1))
    assert jnp.allclose(out1, ref1, rtol=1e-4, atol=1e-5), (out1, ref1)

    # Tiled grid (2x2): exercises diag / off-diag tiles and the resident accumulator.
    B2, D2 = 256, 256
    reps2 = jax.random.normal(k2, (2 * B2, D2), dtype=jnp.float32)
    out2 = jax.block_until_ready(
        mix_aware_loss(reps2, B2, block_q=128, block_k=128))
    ref2 = jax.block_until_ready(_reference_loss(reps2, B2))
    assert jnp.allclose(out2, ref2, rtol=1e-4, atol=1e-5), (out2, ref2)

    # Default tile picking (tm=128, tn=256): unequal tiles, diag intersection path.
    B3, D3 = 256, 128
    reps3 = jax.random.normal(k3, (2 * B3, D3), dtype=jnp.float32)
    out3 = jax.block_until_ready(mix_aware_loss(reps3, B3))
    ref3 = jax.block_until_ready(_reference_loss(reps3, B3))
    assert jnp.allclose(out3, ref3, rtol=1e-4, atol=1e-5), (out3, ref3)

    print("KERNEL_OK")
</pallas_src>

<mosaic_0001>
module attributes {stable_mosaic.version = 11 : i64} {
  func.func @_mix_aware_loss_kernel(%arg0: i32, %arg1: i32, %arg2: memref<8x128xf32, #tpu.memory_space<vmem>>, %arg3: memref<8x128xf32, #tpu.memory_space<vmem>>, %arg4: memref<8x128xf32, #tpu.memory_space<vmem>>, %arg5: memref<8x1xf32, #tpu.memory_space<vmem>>, %arg6: memref<8x1xf32, #tpu.memory_space<vmem>>, %arg7: memref<1x8xf32, #tpu.memory_space<vmem>>, %arg8: memref<8x1xf32, #tpu.memory_space<vmem>>) attributes {dimension_semantics = [#tpu.dimension_semantics<parallel>, #tpu.dimension_semantics<arbitrary>], iteration_bounds = array<i64: 1, 1>, scalar_prefetch = 0 : i64, scratch_operands = 0 : i64, tpu.core_type = #tpu.core_type<tc>, window_params = [{transform_indices = @transform_0, window_bounds = array<i64: 8, 128>}, {transform_indices = @transform_1, window_bounds = array<i64: 8, 128>}, {transform_indices = @transform_2, window_bounds = array<i64: 8, 128>}, {transform_indices = @transform_3, window_bounds = array<i64: 8, 1>}, {transform_indices = @transform_4, window_bounds = array<i64: 8, 1>}, {transform_indices = @transform_5, window_bounds = array<i64: 1, 8>}, {transform_indices = @transform_6, window_bounds = array<i64: 8, 1>}]} {
    %c0 = arith.constant 0 : index
    %c0_0 = arith.constant 0 : index
    %0 = vector.load %arg2[%c0, %c0_0] : memref<8x128xf32, #tpu.memory_space<vmem>>, vector<8x128xf32>
    %c0_1 = arith.constant 0 : index
    %c0_2 = arith.constant 0 : index
    %1 = vector.load %arg3[%c0_1, %c0_2] : memref<8x128xf32, #tpu.memory_space<vmem>>, vector<8x128xf32>
    %cst = arith.constant dense<0.000000e+00> : vector<8x8xf32>
    %2 = tpu.matmul %0, %1, %cst {dimension_numbers = #tpu.dot_dimension_numbers<[1], [1], [0], [0], [0, 0, 1, 0], [], []>} : vector<8x128xf32>, vector<8x128xf32>, vector<8x8xf32> -> vector<8x8xf32>
    %c0_3 = arith.constant 0 : index
    %c0_4 = arith.constant 0 : index
    %3 = vector.load %arg5[%c0_3, %c0_4] : memref<8x1xf32, #tpu.memory_space<vmem>>, vector<8x1xf32>
    %c0_5 = arith.constant 0 : index
    %c0_6 = arith.constant 0 : index
    %4 = vector.load %arg7[%c0_5, %c0_6] : memref<1x8xf32, #tpu.memory_space<vmem>>, vector<1x8xf32>
    %5 = vector.broadcast %3 : vector<8x1xf32> to vector<8x8xf32>
    %6 = arith.mulf %2, %5 : vector<8x8xf32>
    %7 = vector.broadcast %4 : vector<1x8xf32> to vector<8x8xf32>
    %8 = arith.mulf %6, %7 : vector<8x8xf32>
    %cst_7 = arith.constant 1.000000e+00 : f32
    %9 = vector.broadcast %cst_7 : f32 to vector<8x8xf32>
    %10 = arith.subf %8, %9 : vector<8x8xf32>
    %cst_8 = arith.constant 1.000000e+01 : f32
    %11 = vector.broadcast %cst_8 : f32 to vector<8x8xf32>
    %12 = arith.mulf %10, %11 : vector<8x8xf32>
    %13 = math.exp %12 : vector<8x8xf32>
    %c0_i32 = arith.constant 0 : i32
    %14 = arith.cmpi eq, %arg1, %c0_i32 : i32
    %15 = arith.extui %14 : i1 to i32
    %c0_i32_9 = arith.constant 0 : i32
    %16 = arith.cmpi ne, %15, %c0_i32_9 : i32
    scf.if %16 {
      %cst_17 = arith.constant 0.000000e+00 : f32
      %32 = vector.broadcast %cst_17 : f32 to vector<8x1xf32>
      %c0_18 = arith.constant 0 : index
      %c0_19 = arith.constant 0 : index
      %33 = vector.load %arg8[%c0_18, %c0_19] : memref<8x1xf32, #tpu.memory_space<vmem>>, vector<8x1xf32>
      tpu.vector_store %arg8[%c0_18, %c0_19], %32 {strides = array<i32>} : memref<8x1xf32, #tpu.memory_space<vmem>>, vector<8x1xf32>,
    } else {
    }
    %c8_i32 = arith.constant 8 : i32
    %17 = arith.muli %arg0, %c8_i32 : i32
    %c8_i32_10 = arith.constant 8 : i32
    %18 = arith.muli %arg1, %c8_i32_10 : i32
    %c8_i32_11 = arith.constant 8 : i32
    %19 = arith.addi %18, %c8_i32_11 : i32
    %20 = arith.cmpi slt, %17, %19 : i32
    %c8_i32_12 = arith.constant 8 : i32
    %21 = arith.addi %17, %c8_i32_12 : i32
    %22 = arith.cmpi slt, %18, %21 : i32
    %23 = arith.andi %20, %22 : i1
    %24 = arith.extui %23 : i1 to i32
    %c0_i32_13 = arith.constant 0 : i32
    %25 = arith.cmpi ne, %24, %c0_i32_13 : i32
    scf.if %25 {
      %32 = tpu.iota {dimensions = array<i32: 0>} : vector<8x8xi32>
      %33 = vector.broadcast %17 : i32 to vector<8x8xi32>
      %34 = arith.addi %33, %32 : vector<8x8xi32>
      %35 = tpu.iota {dimensions = array<i32: 1>} : vector<8x8xi32>
      %36 = vector.broadcast %18 : i32 to vector<8x8xi32>
      %37 = arith.addi %36, %35 : vector<8x8xi32>
      %38 = arith.cmpi ne, %34, %37 : vector<8x8xi32>
      %cst_17 = arith.constant 0.000000e+00 : f32
      %39 = vector.broadcast %cst_17 : f32 to vector<8x8xf32>
      %40 = arith.select %38, %13, %39 : vector<8x8xi1>, vector<8x8xf32>
      %c0_18 = arith.constant 0 : index
      %c0_19 = arith.constant 0 : index
      %41 = vector.load %arg8[%c0_18, %c0_19] : memref<8x1xf32, #tpu.memory_space<vmem>>, vector<8x1xf32>
      %cst_20 = arith.constant dense<0.000000e+00> : vector<8xf32>
      %42 = vector.multi_reduction <add>, %40, %cst_20 [1] : vector<8x8xf32> to vector<8xf32>
      %43 = vector.shape_cast %42 : vector<8xf32> to vector<8x1xf32>
      %44 = arith.addf %41, %43 : vector<8x1xf32>
      %c0_21 = arith.constant 0 : index
      %c0_22 = arith.constant 0 : index
      %45 = vector.load %arg8[%c0_21, %c0_22] : memref<8x1xf32, #tpu.memory_space<vmem>>, vector<8x1xf32>
      tpu.vector_store %arg8[%c0_21, %c0_22], %44 {strides = array<i32>} : memref<8x1xf32, #tpu.memory_space<vmem>>, vector<8x1xf32>,
    } else {
    }
    %true = arith.constant true
    %26 = arith.xori %23, %true : i1
    %27 = arith.extui %26 : i1 to i32
    %c0_i32_14 = arith.constant 0 : i32
    %28 = arith.cmpi ne, %27, %c0_i32_14 : i32
    scf.if %28 {
      %c0_17 = arith.constant 0 : index
      %c0_18 = arith.constant 0 : index
      %32 = vector.load %arg8[%c0_17, %c0_18] : memref<8x1xf32, #tpu.memory_space<vmem>>, vector<8x1xf32>
      %cst_19 = arith.constant dense<0.000000e+00> : vector<8xf32>
      %33 = vector.multi_reduction <add>, %13, %cst_19 [1] : vector<8x8xf32> to vector<8xf32>
      %34 = vector.shape_cast %33 : vector<8xf32> to vector<8x1xf32>
      %35 = arith.addf %32, %34 : vector<8x1xf32>
      %c0_20 = arith.constant 0 : index
      %c0_21 = arith.constant 0 : index
      %36 = vector.load %arg8[%c0_20, %c0_21] : memref<8x1xf32, #tpu.memory_space<vmem>>, vector<8x1xf32>
      tpu.vector_store %arg8[%c0_20, %c0_21], %35 {strides = array<i32>} : memref<8x1xf32, #tpu.memory_space<vmem>>, vector<8x1xf32>,
    } else {
    }
    %c0_i32_15 = arith.constant 0 : i32
    %29 = arith.cmpi eq, %arg1, %c0_i32_15 : i32
    %30 = arith.extui %29 : i1 to i32
    %c0_i32_16 = arith.constant 0 : i32
    %31 = arith.cmpi ne, %30, %c0_i32_16 : i32
    scf.if %31 {
      %c0_17 = arith.constant 0 : index
      %c0_18 = arith.constant 0 : index
      %32 = vector.load %arg4[%c0_17, %c0_18] : memref<8x128xf32, #tpu.memory_space<vmem>>, vector<8x128xf32>
      %33 = arith.mulf %0, %32 : vector<8x128xf32>
      %cst_19 = arith.constant dense<0.000000e+00> : vector<8xf32>
      %34 = vector.multi_reduction <add>, %33, %cst_19 [1] : vector<8x128xf32> to vector<8xf32>
      %35 = vector.shape_cast %34 : vector<8xf32> to vector<8x1xf32>
      %36 = arith.mulf %35, %3 : vector<8x1xf32>
      %c0_20 = arith.constant 0 : index
      %c0_21 = arith.constant 0 : index
      %37 = vector.load %arg6[%c0_20, %c0_21] : memref<8x1xf32, #tpu.memory_space<vmem>>, vector<8x1xf32>
      %38 = arith.mulf %36, %37 : vector<8x1xf32>
      %c0_22 = arith.constant 0 : index
      %c0_23 = arith.constant 0 : index
      %39 = vector.load %arg8[%c0_22, %c0_23] : memref<8x1xf32, #tpu.memory_space<vmem>>, vector<8x1xf32>
      %40 = math.log %39 : vector<8x1xf32>
      %cst_24 = arith.constant 1.000000e+01 : f32
      %41 = vector.broadcast %cst_24 : f32 to vector<8x1xf32>
      %42 = arith.addf %40, %41 : vector<8x1xf32>
      %cst_25 = arith.constant 2.000000e+01 : f32
      %43 = vector.broadcast %cst_25 : f32 to vector<8x1xf32>
      %44 = arith.mulf %38, %43 : vector<8x1xf32>
      %45 = arith.subf %42, %44 : vector<8x1xf32>
      %c0_26 = arith.constant 0 : index
      %c0_27 = arith.constant 0 : index
      %46 = vector.load %arg8[%c0_26, %c0_27] : memref<8x1xf32, #tpu.memory_space<vmem>>, vector<8x1xf32>
      tpu.vector_store %arg8[%c0_26, %c0_27], %45 {strides = array<i32>} : memref<8x1xf32, #tpu.memory_space<vmem>>, vector<8x1xf32>,
    } else {
    }
    return
  }
  func.func @transform_0(%arg0: i32, %arg1: i32) -> (i32, i32) {
    %c0_i32 = arith.constant 0 : i32
    %c0_i32_0 = arith.constant 0 : i32
    return %arg0, %c0_i32 : i32, i32
  }
  func.func @transform_1(%arg0: i32, %arg1: i32) -> (i32, i32) {
    %c0_i32 = arith.constant 0 : i32
    %c0_i32_0 = arith.constant 0 : i32
    return %arg1, %c0_i32 : i32, i32
  }
  func.func @transform_2(%arg0: i32, %arg1: i32) -> (i32, i32) {
    %c1_i32 = arith.constant 1 : i32
    %0 = arith.addi %arg0, %c1_i32 : i32
    %c0_i32 = arith.constant 0 : i32
    %c0_i32_0 = arith.constant 0 : i32
    return %0, %c0_i32 : i32, i32
  }
  func.func @transform_3(%arg0: i32, %arg1: i32) -> (i32, i32) {
    %c0_i32 = arith.constant 0 : i32
    %c0_i32_0 = arith.constant 0 : i32
    return %arg0, %c0_i32 : i32, i32
  }
  func.func @transform_4(%arg0: i32, %arg1: i32) -> (i32, i32) {
    %c0_i32 = arith.constant 0 : i32
    %c0_i32_0 = arith.constant 0 : i32
    return %arg0, %c0_i32 : i32, i32
  }
  func.func @transform_5(%arg0: i32, %arg1: i32) -> (i32, i32) {
    %c0_i32 = arith.constant 0 : i32
    %c0_i32_0 = arith.constant 0 : i32
    return %c0_i32, %arg1 : i32, i32
  }
  func.func @transform_6(%arg0: i32, %arg1: i32) -> (i32, i32) {
    %c0_i32 = arith.constant 0 : i32
    %c0_i32_0 = arith.constant 0 : i32
    return %arg0, %c0_i32 : i32, i32
  }
}

</mosaic_0001>

<bundles_post_ra>
// kernel: tpu_custom_call.1
= control target key start
LH: loop header
LB: loop body
LE: loop exit
PB: predicated region body
PF: predicated region fallthrough
CT: control target
= control target key end

     0   :  { %11 = vsyncpa [#allocation3], 0  ;;  %s301_s0 = inlined_call_operand.vmem [shape: f32[16,128], index: 0, kind: input, shape index: {}]   ;;  %s302_s1 = inlined_call_operand.hbm [shape: f32[16,128], index: 1, kind: input, shape index: {}]   ;;  %s303_s2 = inlined_call_operand.hbm [shape: f32[16,128], index: 2, kind: input, shape index: {}]   ;;  %s304_s3 = inlined_call_operand.vmem [shape: f32[8,1], index: 3, kind: input, shape index: {}]   ;;  %s305_s4 = inlined_call_operand.vmem [shape: f32[8,1], index: 4, kind: input, shape index: {}]   ;;  %s306_s5 = inlined_call_operand.vmem [shape: f32[1,8], index: 5, kind: input, shape index: {}]   ;;  %s307_s6 = inlined_call_operand.vmem [shape: f32[8,1], index: 6, kind: output, shape index: {}]  }
   0x1   :  { %s20_s23 = sshll.u32 %s302_s1, 4  ;;  %s21_s23 = int_to_ptr.hbm [resolvable:$true] %s20_s23 }
   0x2   :  { %12 = vsyncpa [#allocation5], 0  ;;  %s226_s24 = smov [#allocation2]   ;;  %s162_s28 = scalar_lea.hbm %s303_s2, 8 }
   0x3   :  { %s22_s25 = sshll.u32 %s226_s24, 4  ;;  %s34_s29 = sshll.u32 %s162_s28, 4  ;;  %s23_s25 = int_to_ptr.vmem [resolvable:$true] %s22_s25  ;;  %s35_s29 = int_to_ptr.hbm [resolvable:$true] %s34_s29 }
   0x4   :  { %25 = dma.hbm_to_vmem [thread:$0]  %s21_s23, 128, %s23_s25, [#allocation3]  }
   0x5   :  { %s227_s30 = smov [#allocation4]  }
   0x6   :  { %s36_s7 = sshll.u32 %s227_s30, 4  ;;  %s37_s7 = int_to_ptr.vmem [resolvable:$true] %s36_s7 }
   0x7   :  { %39 = dma.hbm_to_vmem [thread:$0]  %s35_s29, 128, %s37_s7, [#allocation5]  }
   0x8   :  { %222 = dma.done.wait [#allocation3], 128  }
   0x9   :  { %223 = vsyncadd [#allocation3], 4294967168 }
   0xa   :  { %224 = dma.done.wait [#allocation5], 128  }
   0xb   :  { %225 = vsyncadd [#allocation5], 4294967168  ;;  %v228_v0 = vmov 0   ;;  %v56_v1 = vld [vmem:[#allocation2] sm:$0xff]  ;;  %v141_v4 = vld [vmem:[#allocation4] sm:$0xff]  ;;  %vm97_vm0 = vcmask 7168   ;;  %v109_v14 = vlaneseq }
   0xc   :  { %168 = vset.pattern.permute.xlu0 %v228_v0  ;;  %v77_v2 = vld [vmem:[%s304_s3] sm:$0xff]  ;;  %72 = vmatpush.xpose.msra.mxu0 %v56_v1  ;;  %v229_v6 = vmov 0.0   ;;  %vm120_vm2 = vcmask 64512  }
   0xd   :  { %v55_v3 = vld [vmem:[%s301_s0] sm:$0xff]  ;;  %81 = vperm.xlu0 %168, %v77_v2   ;;  %98 = vst.msk [vmem:[%s307_s6] sm:$0xff] %vm97_vm0, %v229_v6  ;;  %v110_v16 = vshrl.u32 %v109_v14, 7  ;;  %v114_v17 = vand.u32 127, %v109_v14 }
   0xe   :  { %v142_v5 = vmul.f32 %v141_v4, %v55_v3  ;;  %v169_v8 = vld [vmem:[%s306_s5] ss:$0 sm:$0xff] }
   0xf   :  { %73 = vmatmul.f32.vlgmr.msra.gmra.mxu0 %v55_v3  ;;  %vm117_vm1 = vcmp.ne.s32.totalorder %v110_v16, %v114_v17  ;;  %v146_v27 = vld [vmem:[%s305_s4] sm:$0xff] }
  0x10   :  { %143 = vadd.xlane.f32.xlu1 %v142_v5 }
  0x14   :  { %v119_v21 = vld [vmem:[%s307_s6] sm:$0xff] }
  0x7f   :  { %v82_v7 = vpop.permute.xlu0 %81 }
  0x83   :  { %v144_v24 = vpop.xlane.xlu1 %143 }
  0x84   :  { %v145_v25 = vmul.f32 %v144_v24, %v77_v2 }
  0x86   :  { %v147_v28 = vmul.f32 %v146_v27, %v145_v25 }
  0x88   :  { %v152_v31 = vmul.f32 20.0, %v147_v28 }
  0x8c   :  { %v74_v9 = vpop.f32.mrf.mxu0 }
  0x8d   :  { %v84_v10 = vmul.f32 %v82_v7, %v74_v9 }
  0x8f   :  { %v88_v11 = vmul.f32 %v169_v8, %v84_v10 }
  0x91   :  { %v163_v12 = vadd.f32 -1.0, %v88_v11 }
  0x93   :  { %v90_v13 = vmul.f32 10.0, %v163_v12 }
  0x95   :  { %v91_v15 = vmul.f32 1.442695, %v90_v13 }
  0x97   :  { %170 = vpow2.f32 %v91_v15 }
  0x9d   :  { %v171_v18 = vpop.eup %170 }
  0x9e   :  { %v118_v19 = vsel %vm117_vm1, %v171_v18, 0.0 }
  0x9f   :  { %v121_v20 = vsel %vm120_vm2, %v118_v19, 0.0 }
  0xa0   :  { %122 = vadd.xlane.f32.xlu0 %v121_v20 }
 0x113   :  { %v123_v22 = vpop.xlane.xlu0 %122 }
 0x114   :  { %v124_v23 = vadd.f32 %v123_v22, %v119_v21 }
 0x116   :  { %126 = vst.msk [vmem:[%s307_s6] sm:$0xff] %vm97_vm0, %v124_v23 }
 0x11d   :  { %v148_v26 = vld [vmem:[%s307_s6] sm:$0xff] }
 0x11e   :  { %172 = vlog2.f32 %v148_v26 }
 0x124   :  { %v173_v29 = vpop.eup %172 }
 0x125   :  { %v150_v30 = vmul.f32 0.6931472, %v173_v29 }
 0x127   :  { %v151_v32 = vadd.f32 10.0, %v150_v30 }
 0x129   :  { %v153_v33 = vsub.f32 %v151_v32, %v152_v31 }
 0x12b   :  { %155 = vst.msk [vmem:[%s307_s6] sm:$0xff] %vm97_vm0, %v153_v33 }
 0x12c   :  { %160 = vsyncpa [#allocation3], 1 }
 0x12d   :  { %161 = vsyncpa [#allocation5], 1 }

</bundles_post_ra>
